<compile_context>
chip_gen: v7x
topology: tpu7x:2x2x1
jax: 0.10.0
libtpu: 0.0.40
codegen_flags: <defaults>
</compile_context>

<pallas_src>
import functools

import jax
import jax.numpy as jnp
from jax import lax
from jax.experimental import pallas as pl
from jax.experimental.pallas import tpu as pltpu


def ssa_kernel(x_ref,      # (Nb, C, L)  Nb batch elements; lane dim = L (dense)
               w_ref,      # (C, C)      spectrally-normalized conv1d weight (out, in); resident
               gamma_ref,  # (1, 1)      scalar gamma, SMEM
               o_ref,      # (Nb, C, L)  output
               *, compute_dtype):
    gamma = gamma_ref[0, 0]
    w = w_ref[...].astype(jnp.float32)
    nb = x_ref.shape[0]
    # nb is a static block-shape constant -> this loop is fully unrolled at trace time.
    for b in range(nb):
        x = x_ref[b]                                     # (C, L)
        xc = x.astype(compute_dtype)

        # xxT = x @ x^T : contract the L (lane) axis of both operands -> (C, C), f32 acc.
        xxT = lax.dot_general(xc, xc, (((1,), (1,)), ((), ())),
                              preferred_element_type=jnp.float32)

        # Reassociation: (x x^T)(W x) == ((x x^T) W) x.  The (C,C)x(C,C) matmul is tiny,
        # keep both operands f32 (xxT entries scale with L -> don't round them to bf16).
        m = jnp.dot(xxT, w, preferred_element_type=jnp.float32)          # (C, C) f32

        # Fold gamma into the small stationary operand instead of the (C, L) result.
        mg = (gamma * m).astype(compute_dtype)

        # o = (gamma * xxT W) @ x : (C, C) x (C, L) -> (C, L), f32 accumulation on the MXU.
        o = jnp.dot(mg, xc, preferred_element_type=jnp.float32)          # (C, L) f32

        o_ref[b] = (o + x.astype(jnp.float32)).astype(o_ref.dtype)


def _batches_per_step(N, C, L, x_bytes, out_bytes, budget_bytes):
    """How many batch elements to fuse per grid step: big enough to amortize the ~0.35 us
    per-step overhead, small enough that the double-buffered in/out slabs fit the VMEM
    budget, and leaving >= 2 grid steps when N >= 2 so v7x's two TensorCores both work."""
    per_batch = 2 * (x_bytes + out_bytes) * C * L        # double-buffered input + output slabs
    nb = max(1, int(budget_bytes // max(per_batch, 1)))
    if N >= 2:
        nb = min(nb, N // 2)                             # keep grid length >= 2 (v7x megacore)
    nb = max(1, min(nb, N))
    while N % nb:                                        # Nb must divide N (no masked tail)
        nb -= 1
    return nb


def simple_self_attention_forward(x_nchw, weight, gamma, *, sym=False,
                                  compute_dtype=jnp.bfloat16,
                                  out_dtype=None,
                                  vmem_budget_bytes=24 << 20):
    """x_nchw: (N, C, H, W). weight: (C, C) or (C, C, 1) spectrally-normalized conv1d weight.
    gamma: scalar. compute_dtype: MXU operand dtype (bf16 default = fast path on all
    generations, f32 accumulation kept; pass jnp.float32 for closest PyTorch numerics)."""
    N, C, H, W = x_nchw.shape
    L = H * W
    w = weight.reshape(C, C).astype(jnp.float32)
    if sym:                                              # sym=True branch of the module
        w = (w + w.T) * 0.5
    x = x_nchw.reshape(N, C, L)                          # pure view (matches torch .view)
    out_dtype = x.dtype if out_dtype is None else out_dtype
    gamma_arr = jnp.asarray(gamma, jnp.float32).reshape(1, 1)

    nb = _batches_per_step(N, C, L, x.dtype.itemsize,
                           jnp.dtype(out_dtype).itemsize, vmem_budget_bytes)
    grid = (N // nb,)

    out = pl.pallas_call(
        functools.partial(ssa_kernel, compute_dtype=compute_dtype),
        out_shape=jax.ShapeDtypeStruct((N, C, L), out_dtype),
        grid=grid,
        in_specs=[
            pl.BlockSpec((nb, C, L), lambda n: (n, 0, 0)),       # Nb batch slabs per step
            pl.BlockSpec((C, C), lambda n: (0, 0)),              # weight: same block every step
            pl.BlockSpec(memory_space=pltpu.MemorySpace.SMEM),   # gamma scalar
        ],
        out_specs=pl.BlockSpec((nb, C, L), lambda n: (n, 0, 0)),
        compiler_params=pltpu.CompilerParams(
            dimension_semantics=("parallel",),    # batch axis -> megacore / v7x 2-TC split
            vmem_limit_bytes=48 << 20,            # raise above default scoped limit, < v7x 64 MiB
        ),
    )(x, w, gamma_arr)
    return out.reshape(N, C, H, W)


def spectral_normalize(w, key, n_iter=50, eps=1e-12):
    """Mirror torch.nn.utils.spectral_norm at convergence: w / sigma_max(w) via power iteration."""
    # TODO(synk): PyTorch runs ONE power iteration per forward with a persistent `u` buffer
    #             (stateful, training-time detail); here we iterate to convergence from a fixed seed.
    u = jax.random.normal(key, (w.shape[0],), jnp.float32)
    u = u / (jnp.linalg.norm(u) + eps)

    def body(_, uv):
        u, _ = uv
        v = w.T @ u
        v = v / (jnp.linalg.norm(v) + eps)
        u_new = w @ v
        u_new = u_new / (jnp.linalg.norm(u_new) + eps)
        return (u_new, v)

    u, v = lax.fori_loop(0, n_iter, body, (u, jnp.zeros((w.shape[1],), jnp.float32)))
    sigma = u @ (w @ v)
    return w / sigma


def simple_self_attention_reference(x_nchw, weight, gamma, sym=False):
    """Pure-JAX f32 reference mirroring the PyTorch forward (original association order)."""
    N, C, H, W = x_nchw.shape
    w = weight.reshape(C, C).astype(jnp.float32)
    if sym:
        w = (w + w.T) * 0.5
    x = x_nchw.reshape(N, C, H * W).astype(jnp.float32)
    hp = jax.lax.Precision.HIGHEST
    convx = jnp.einsum('oc,ncl->nol', w, x, precision=hp)
    xxT = jnp.einsum('ncl,ndl->ncd', x, x, precision=hp)
    o = jnp.einsum('ncd,ndl->ncl', xxT, convx, precision=hp)
    out = gamma * o + x
    return out.reshape(N, C, H, W)


if __name__ == "__main__":
    # Small shapes implied by the module: NCHW input, channels == conv width.
    # L = H*W = 256 is a multiple of 128, so the kernel's lane dim is dense.
    N, ni, H, W = 2, 64, 16, 16

    key = jax.random.PRNGKey(0)
    kx, kw, ku = jax.random.split(key, 3)
    x = jax.random.normal(kx, (N, ni, H, W), jnp.float32)

    # conv1d(ni, ni, ks=1, bias=False): kaiming_normal_ init, then spectral_norm.
    w_raw = jax.random.normal(kw, (ni, ni), jnp.float32) * jnp.sqrt(2.0 / ni)
    w = spectral_normalize(w_raw, ku)

    # The module initializes gamma = 0 (output == input); use a nonzero gamma to exercise
    # the full attention path, and verify the gamma = 0 init behaviour separately.
    gamma = jnp.float32(0.25)

    ref = simple_self_attention_reference(x, w, gamma)
    scale = jnp.max(jnp.abs(ref))

    # Default path: bf16 MXU operands, f32 accumulation/epilogue (reassociated matmul chain,
    # so rounding differs slightly from the reference ordering -> relative tolerance).
    out_bf = jax.block_until_ready(simple_self_attention_forward(x, w, gamma))
    assert out_bf.shape == x.shape
    assert jnp.max(jnp.abs(out_bf - ref)) <= 5e-2 * scale + 1e-3, "bf16 kernel mismatch vs reference"

    # f32-operand path (closest to PyTorch numerics).
    out_f32 = jax.block_until_ready(
        simple_self_attention_forward(x, w, gamma, compute_dtype=jnp.float32))
    assert jnp.max(jnp.abs(out_f32 - ref)) <= 2e-3 * scale + 1e-3, "f32 kernel mismatch vs reference"

    # gamma = 0 (module init): output must equal the input exactly.
    out0 = jax.block_until_ready(simple_self_attention_forward(x, w, jnp.float32(0.0)))
    assert jnp.allclose(out0, x, atol=1e-5, rtol=1e-5), "gamma=0 must return the input"

    print("KERNEL_OK")
</pallas_src>

<mosaic_0001>
module attributes {stable_mosaic.version = 11 : i64} {
  func.func @ssa_kernel(%arg0: i32, %arg1: memref<1x64x256xf32, #tpu.memory_space<vmem>>, %arg2: memref<64x64xf32, #tpu.memory_space<vmem>>, %arg3: memref<1x1xf32, #tpu.memory_space<smem>>, %arg4: memref<1x64x256xf32, #tpu.memory_space<vmem>>) attributes {dimension_semantics = [#tpu.dimension_semantics<parallel>], iteration_bounds = array<i64: 2>, scalar_prefetch = 0 : i64, scratch_operands = 0 : i64, tpu.core_type = #tpu.core_type<tc>, window_params = [{transform_indices = @transform_0, window_bounds = array<i64: 1, 64, 256>}, {pipeline_mode = #tpu.pipeline_mode<synchronous>, transform_indices = @transform_1, window_bounds = array<i64: 64, 64>}, {transform_indices = @transform_2, window_bounds = array<i64: 1, 1>}, {transform_indices = @transform_3, window_bounds = array<i64: 1, 64, 256>}]} {
    %c0 = arith.constant 0 : index
    %c0_0 = arith.constant 0 : index
    %0 = memref.load %arg3[%c0, %c0_0] : memref<1x1xf32, #tpu.memory_space<smem>>
    %c0_1 = arith.constant 0 : index
    %c0_2 = arith.constant 0 : index
    %1 = vector.load %arg2[%c0_1, %c0_2] : memref<64x64xf32, #tpu.memory_space<vmem>>, vector<64x64xf32>
    %c0_3 = arith.constant 0 : index
    %c0_4 = arith.constant 0 : index
    %c0_5 = arith.constant 0 : index
    %2 = vector.load %arg1[%c0_3, %c0_4, %c0_5] : memref<1x64x256xf32, #tpu.memory_space<vmem>>, vector<1x64x256xf32>
    %3 = vector.shape_cast %2 : vector<1x64x256xf32> to vector<64x256xf32>
    %4 = arith.truncf %3 : vector<64x256xf32> to vector<64x256xbf16>
    %cst = arith.constant dense<0.000000e+00> : vector<64x64xf32>
    %5 = tpu.matmul %4, %4, %cst {dimension_numbers = #tpu.dot_dimension_numbers<[1], [1], [0], [0], [0, 0, 1, 0], [], []>} : vector<64x256xbf16>, vector<64x256xbf16>, vector<64x64xf32> -> vector<64x64xf32>
    %cst_6 = arith.constant dense<0.000000e+00> : vector<64x64xf32>
    %6 = tpu.matmul %5, %1, %cst_6 {dimension_numbers = #tpu.dot_dimension_numbers<[1], [0], [0], [1], [0, 0, 1, 1], [], []>} : vector<64x64xf32>, vector<64x64xf32>, vector<64x64xf32> -> vector<64x64xf32>
    %7 = vector.broadcast %0 : f32 to vector<64x64xf32>
    %8 = arith.mulf %7, %6 : vector<64x64xf32>
    %9 = arith.truncf %8 : vector<64x64xf32> to vector<64x64xbf16>
    %cst_7 = arith.constant dense<0.000000e+00> : vector<64x256xf32>
    %10 = tpu.matmul %9, %4, %cst_7 {dimension_numbers = #tpu.dot_dimension_numbers<[1], [0], [0], [1], [0, 0, 1, 1], [], []>} : vector<64x64xbf16>, vector<64x256xbf16>, vector<64x256xf32> -> vector<64x256xf32>
    %11 = arith.addf %10, %3 : vector<64x256xf32>
    %c0_8 = arith.constant 0 : index
    %c0_9 = arith.constant 0 : index
    %c0_10 = arith.constant 0 : index
    %12 = vector.load %arg4[%c0_8, %c0_9, %c0_10] : memref<1x64x256xf32, #tpu.memory_space<vmem>>, vector<1x64x256xf32>
    %13 = vector.shape_cast %12 : vector<1x64x256xf32> to vector<64x256xf32>
    %14 = vector.shape_cast %11 : vector<64x256xf32> to vector<1x64x256xf32>
    tpu.vector_store %arg4[%c0_8, %c0_9, %c0_10], %14 {strides = array<i32>} : memref<1x64x256xf32, #tpu.memory_space<vmem>>, vector<1x64x256xf32>,
    return
  }
  func.func @transform_0(%arg0: i32) -> (i32, i32, i32) {
    %c0_i32 = arith.constant 0 : i32
    %c0_i32_0 = arith.constant 0 : i32
    %c0_i32_1 = arith.constant 0 : i32
    return %arg0, %c0_i32, %c0_i32_0 : i32, i32, i32
  }
  func.func @transform_1(%arg0: i32) -> (i32, i32) {
    %c0_i32 = arith.constant 0 : i32
    %c0_i32_0 = arith.constant 0 : i32
    %c0_i32_1 = arith.constant 0 : i32
    return %c0_i32, %c0_i32_0 : i32, i32
  }
  func.func @transform_2(%arg0: i32) -> (i32, i32) {
    %c0_i32 = arith.constant 0 : i32
    %c0_i32_0 = arith.constant 0 : i32
    %c0_i32_1 = arith.constant 0 : i32
    return %c0_i32, %c0_i32_0 : i32, i32
  }
  func.func @transform_3(%arg0: i32) -> (i32, i32, i32) {
    %c0_i32 = arith.constant 0 : i32
    %c0_i32_0 = arith.constant 0 : i32
    %c0_i32_1 = arith.constant 0 : i32
    return %arg0, %c0_i32, %c0_i32_0 : i32, i32, i32
  }
}

</mosaic_0001>

<bundles_post_ra>
// kernel: tpu_custom_call.1
= control target key start
LH: loop header
LB: loop body
LE: loop exit
PB: predicated region body
PF: predicated region fallthrough
CT: control target
= control target key end

     0   :  { %s1280_s0 = inlined_call_operand.hbm [shape: f32[2,64,256], index: 0, kind: input, shape index: {}]   ;;  %s1281_s1 = inlined_call_operand.hbm [shape: f32[64,64], index: 1, kind: input, shape index: {}]   ;;  %s1282_s2 = inlined_call_operand.<no memory space> [shape: f32[1,1], index: 2, kind: input, shape index: {}]   ;;  %s1283_s3 = inlined_call_operand.hbm [shape: f32[2,64,256], index: 3, kind: output, shape index: {}]  }
   0x1   :  { %8 = sst [smem:[#allocation2]] %s1282_s2 }
   0x2   :  { %9 = vsyncpa [#allocation4], 0 }
   0x3   :  { %11 = vsyncpa [#allocation4 + $0x1], 0 }
   0x4   :  { %12 = vsyncpa [#allocation7], 0 }
   0x5   :  { %13 = vsyncpa [#allocation5], 0 }
   0x6   :  { %15 = vsyncpa [#allocation5 + $0x1], 0  ;;  %s962_s14 = smov 0   ;;  %s964_s15 = smov 0  }
   0x7   :  { %s966_s16 = smov 0   ;;  %s968_s17 = smov 0  }
   0x8 LB: > { %s983_s2 = sadd.s32 4294967295, %s927_s17   ;;  %s645_s18 = sadd.s32 4294967294, %s927_s17   ;;  %s927_s17 = sphi %s968_s17, %s1303_s17   ;;  %s923_s16 = sphi %s966_s16, %s1302_s16   ;;  %s919_s15 = sphi %s964_s15, %s1301_s15   ;;  %s915_s14 = sphi %s962_s14, %s1300_s14  }
   0x9   : > { %p41_p0 = scmp.ne.s32.totalorder %s919_s15, %s915_s14  ;;  %p1284_p1 = scmp.eq.s32.totalorder %s983_s2, 0 }
   0xa   : > { %p113_p3 = scmp.eq.s32.totalorder %s645_s18, 1  ;;  %p646_p5 = scmp.ge.s32.totalorder %s927_s17, 1 }
   0xb   : > { %p992_p4 = por %p1284_p1, %p41_p0  ;;  %p120_p7 = scmp.lt.s32.totalorder %s927_s17, 3 }
   0xc   : > { %p997_p6 = por %p113_p3, %p41_p0  ;;  %s929_s22 = smov [#allocation6]  }
   0xd   : > { %s1287_s19 = scalar_select %p992_p4, 1, 0 }
   0xe   : > { %s1288_s20 = scalar_select %p997_p6, 1, 0 }
   0xf   : > { %p1002_p8 = pnand %p646_p5, %p120_p7  ;;  %s132_s23 = sshll.u32 %s929_s22, 4  ;;  %s1006_s23 = int_to_ptr.vmem [resolvable:$true] %s132_s23 }
  0x10   : > { %s1018_s25 = sadd.s32 1, %s927_s17   ;;  %s28_s26 = sadd.s32 1, %s923_s16 }
  0x11   : > { %s1289_s21 = scalar_select %p1002_p8, 1, 0 }
  0x12   : > { %p743_p9 = pneg %p1002_p8  ;;  %s25_s27 = ssub.s32 %s927_s17, %s1018_s25 }
  0x13   : > { %s799_s30 = scalar_lea.hbm %s1281_s1, 1024 }
  0x14   : > { %p1013_p11 = pnand %p743_p9, %p1284_p1  ;;  %p800_p12 = scmp.ne.s32.totalorder %s1281_s1, %s799_s30 }
  0x15   : > { %p806_p5 = scmp.lt.u32.totalorder %s799_s30, %s1281_s1 }
  0x16   : > { %p801_p13 = pneg %p1013_p11 }
  0x18   : > { %p802_p0 = pnand %p801_p13, %p800_p12 }
  0x1a   : > { %p803_p3 = pneg %p802_p0 }
  0x1c   : > { %p808_p7 = pnand %p806_p5, %p803_p3 }
  0x1e   : > { %811 = shalt.err (!%p808_p7)
}
  0x1f   : > { %s812_s8 = scalar_lea.vmem %s1006_s23, 1024  ;;  %p820_p2 = scmp.lt.s32.totalorder %s1006_s23, %s1006_s23 }
  0x20   : > { %p813_p9 = scmp.ne.s32.totalorder %s1006_s23, %s812_s8  ;;  %p821_p6 = scmp.lt.s32.totalorder %s812_s8, %s812_s8 }
  0x22   : > { %p815_p10 = pnand %p813_p9, %p801_p13  ;;  %p822_p4 = por %p821_p6, %p820_p2 }
  0x24   : > { %p816_p1 = pneg %p815_p10 }
  0x26   : > { %p823_p8 = pnand %p822_p4, %p816_p1 }
  0x28   : > { %826 = shalt.err (!%p823_p8)
}
  0x29   : > { %s930_s9 = smov 128   ;;  %s931_s10 = smov 8  }
  0x2a   : > { %746 = dma.hbm_to_vmem [thread:$0]  (!%p1013_p11), %s1281_s1, 1024, %s1006_s23, [#allocation7], %s930_s9, %s930_s9, %s931_s10  }
  0x2b   : > { %p26_p2 = scmp.eq.s32.totalorder %s25_s27, 0  ;;  %p35_p1 = scmp.ne.s32.totalorder %s923_s16, %s919_s15 }
  0x2c   : > { %p36_p4 = scmp.eq.s32.totalorder %s927_s17, 0  ;;  %p756_p6 = scmp.lt.s32.totalorder %s927_s17, 2 }
  0x2d   : > { %s1049_s13 = scalar_select %p26_p2, %s923_s16, %s28_s26  }
  0x2e   : > { %p37_p8 = por %p36_p4, %p35_p1  ;;  %p1291_p10 = scmp.eq.s32.totalorder %s983_s2, 1 }
  0x2f   : > { %s149_s22 = sand.u32 1, %s923_s16   ;;  %s673_s28 = sshll.u32 %s927_s17, 11 }
  0x30   : > { %p1053_p12 = por %p1291_p10, %p35_p1  ;;  %s649_s29 = sshll.u32 %s149_s22, 7 }
  0x31   : > { %s1062_s4 = scalar_lea.hbm %s1280_s0, %s673_s28  ;;  %s153_s23 = scalar_lea.vmem [#allocation3], %s649_s29 }
  0x32   : > { %s160_s26 = sshll.u32 %s153_s23, 4  ;;  %p1064_p11 = pnand %p756_p6, %p37_p8  ;;  %s1068_s26 = int_to_ptr.vmem [resolvable:$true] %s160_s26 }
  0x33   : > { %s1070_s5 = scalar_lea.sflag [#allocation4], %s149_s22  ;;  %s827_s6 = scalar_lea.hbm %s1062_s4, 2048 }
  0x34   : > { %p828_p13 = scmp.ne.s32.totalorder %s1062_s4, %s827_s6  ;;  %p829_p0 = pneg %p1064_p11 }
  0x35   : > { %s832_s9 = scalar_lea.hbm %s1280_s0, 4096  ;;  %p833_p7 = scmp.lt.u32.totalorder %s1062_s4, %s1280_s0 }
  0x36   : > { %p830_p3 = pnand %p829_p0, %p828_p13  ;;  %p834_p9 = scmp.lt.u32.totalorder %s832_s9, %s827_s6 }
  0x37   : > { %p836_p1 = scmp.lt.u32.totalorder %s827_s6, %s1062_s4 }
  0x38   : > { %p831_p5 = pneg %p830_p3  ;;  %p835_p2 = por %p834_p9, %p833_p7 }
  0x3a   : > { %p837_p4 = por %p836_p1, %p835_p2 }
  0x3c   : > { %p838_p6 = pnand %p837_p4, %p831_p5 }
  0x3e   : > { %841 = shalt.err (!%p838_p6)
}
  0x3f   : > { %s842_s12 = scalar_lea.vmem %s1068_s26, 2048  ;;  %s932_s22 = smov [#allocation3]  }
  0x40   : > { %p843_p8 = scmp.ne.s32.totalorder %s1068_s26, %s842_s12  ;;  %s847_s28 = sshll.u32 %s932_s22, 4  ;;  %s848_s28 = int_to_ptr.vmem [resolvable:$false] %s847_s28 }
  0x41   : > { %s849_s29 = scalar_lea.vmem %s848_s28, 4096  ;;  %p850_p3 = scmp.lt.s32.totalorder %s1068_s26, %s848_s28 }
  0x42   : > { %p845_p10 = pnand %p843_p8, %p829_p0  ;;  %p851_p7 = scmp.lt.s32.totalorder %s849_s29, %s842_s12 }
  0x44   : > { %p846_p13 = pneg %p845_p10  ;;  %p852_p9 = por %p851_p7, %p850_p3 }
  0x46   : > { %p853_p2 = pnand %p852_p9, %p846_p13 }
  0x48   : > { %856 = shalt.err (!%p853_p2)
}
  0x49   : > { %s933_s24 = smov 256   ;;  %s934_s30 = smov 16  }
  0x4a   : > { %750 = dma.hbm_to_vmem [thread:$0]  (!%p1064_p11), %s1062_s4, 2048, %s1068_s26, %s1070_s5, %s933_s24, %s933_s24, %s934_s30  }
  0x4b   : > { %p1294_p0 = scmp.ne.s32.totalorder %s1289_s21, 0 }
  0x4c   : > { %s1101_s23 = sand.u32 (!%p1294_p0), 1, %s919_s15   ;;  %p1295_p5 = scmp.ne.s32.totalorder (!%p1294_p0), %s1287_s19, 0 }
  0x4d   : > { %172 = sbr.rel (%p1294_p0) target bundleno = 810 (0x32a), region = 32  ;;  %s653_s6 = sshll.u32 (!%p1294_p0), %s1101_s23, 7 }
  0x4e   : > { %s175_s7 = scalar_lea.sflag (!%p1294_p0), [#allocation4], %s1101_s23  ;;  %s1107_s8 = scalar_lea.vmem (!%p1294_p0), [#allocation3], %s653_s6 }
  0x54   : > { %902 = dma.done.wait (%p1295_p5), %s175_s7, 2048  }
  0x55   : > { %904 = vsyncadd (%p1295_p5), %s175_s7, 4294965248  ;;  %p1296_p11 = scmp.eq.s32.totalorder %s983_s2, 0 }
  0x57   : > { %906 = dma.done.wait (%p1296_p11), [#allocation7], 1024   ;;  %p1297_p1 = pmov %p1296_p11 }
  0x58   : > { %v1118_v0 = vld [vmem:[%s1107_s8 + $0x8] sm:$0xff]  ;;  %v1121_v1 = vld [vmem:[%s1107_s8 + $0x18] sm:$0xff]  ;;  %v1124_v2 = vld [vmem:[%s1107_s8] sm:$0xff]  ;;  %vm304_vm0 = vcmask 523264   ;;  %v935_v52 = vmov 0   ;;  %s206_s19 = sld [smem:[#allocation2]] }
  0x59   : > { %908 = vsyncadd (%p1297_p1), [#allocation7], 4294966272  ;;  %v232_v3 = vpack.c.bf16 %v1121_v1, %v1118_v0  ;;  %v1129_v4 = vld [vmem:[%s1107_s8 + $0x10] sm:$0xff]  ;;  %v1132_v5 = vld [vmem:[%s1107_s8 + $0x28] sm:$0xff]  ;;  %s1197_s21 = scalar_lea.vmem [#allocation8], %s653_s6  ;;  %s674_s4 = sshll.u32 %s983_s2, 11 }
  0x5a   : > { %v1135_v6 = vld [vmem:[%s1107_s8 + $0x38] sm:$0xff]  ;;  %v231_v7 = vpack.c.bf16 %v1129_v4, %v1124_v2  ;;  %v1142_v9 = vld [vmem:[%s1107_s8 + $0x20] sm:$0xff]  ;;  %v1145_v10 = vld [vmem:[%s1107_s8 + $0x30] sm:$0xff]  ;;  %s562_s26 = sshll.u32 %s1197_s21, 4  ;;  %s1230_s9 = scalar_lea.hbm %s1283_s3, %s674_s4  ;;  %s1232_s26 = int_to_ptr.vmem [resolvable:$true] %s562_s26 }
  0x5b   : > { %v234_v8 = vpack.c.bf16 %v1135_v6, %v1132_v5  ;;  %239 = vmatprep.subr.bf16.mxu0 %v232_v3  ;;  %271 = vmatprep.mubr.bf16.mxu0 %v232_v3  ;;  %v1148_v11 = vld [vmem:[%s1107_s8 + $0x48] sm:$0xff]  ;;  %v207_v12 = vld [vmem:[#allocation6] sm:$0xff]  ;;  %v1151_v14 = vld [vmem:[%s1107_s8 + $0x58] sm:$0xff]  ;;  %v233_v21 = vpack.c.bf16 %v1145_v10, %v1142_v9  ;;  %s549_s2 = scalar_lea.sflag [#allocation5], %s1101_s23  ;;  %s857_s10 = scalar_lea.vmem %s1232_s26, 2048 }
  0x5c   : > { %240 = vmatpush1.bf16.xpose.msra.mxu0 %v231_v7  ;;  %v208_v13 = vld [vmem:[#allocation6 + $0x8] sm:$0xff]  ;;  %v209_v16 = vld [vmem:[#allocation6 + $0x10] sm:$0xff]  ;;  %v210_v17 = vld [vmem:[#allocation6 + $0x18] sm:$0xff]  ;;  %v236_v22 = vpack.c.bf16 %v1151_v14, %v1148_v11  ;;  %p858_p4 = scmp.ne.s32.totalorder %s1232_s26, %s857_s10  ;;  %s936_s11 = smov [#allocation8]  }
  0x5d   : > { %241 = vmatprep.subr.bf16.mxu0 %v234_v8  ;;  %v719_v15 = vpack.c.bf16 %v208_v13, %v207_v12  ;;  %v723_v18 = vpack.c.bf16 %v210_v17, %v209_v16  ;;  %v211_v19 = vld [vmem:[#allocation6 + $0x20] sm:$0xff]  ;;  %v212_v20 = vld [vmem:[#allocation6 + $0x28] sm:$0xff]  ;;  %v213_v24 = vld [vmem:[#allocation6 + $0x30] sm:$0xff]  ;;  %s861_s12 = sshll.u32 %s936_s11, 4  ;;  %s862_s12 = int_to_ptr.vmem [resolvable:$false] %s861_s12 }
  0x5e   : > { %v727_v23 = vpack.c.bf16 %v212_v20, %v211_v19  ;;  %v214_v25 = vld [vmem:[#allocation6 + $0x38] sm:$0xff]  ;;  %v1158_v26 = vld [vmem:[%s1107_s8 + $0x40] sm:$0xff]  ;;  %v1161_v27 = vld [vmem:[%s1107_s8 + $0x50] sm:$0xff]  ;;  %v434_v53 = vstv %s206_s19  ;;  %p859_p6 = pnand %p858_p4, %p1053_p12  ;;  %s863_s22 = scalar_lea.vmem %s862_s12, 4096 }
  0x5f   : > { %720 = vmatprep.subr.bf16.mxu1 %v719_v15  ;;  %v1164_v28 = vld [vmem:[%s1107_s8 + $0x68] sm:$0xff]  ;;  %v1167_v29 = vld [vmem:[%s1107_s8 + $0x78] sm:$0xff]  ;;  %v731_v30 = vpack.c.bf16 %v214_v25, %v213_v24  ;;  %v235_v31 = vpack.c.bf16 %v1161_v27, %v1158_v26  ;;  %v1174_v33 = vld [vmem:[%s1107_s8 + $0x60] sm:$0xff]  ;;  %p864_p10 = scmp.lt.s32.totalorder %s1232_s26, %s862_s12  ;;  %p865_p13 = scmp.lt.s32.totalorder %s863_s22, %s857_s10 }
  0x60   : > { %722 = vmatpush3.bf16.msra.mxu1 %v719_v15  ;;  %v238_v32 = vpack.c.bf16 %v1167_v29, %v1164_v28  ;;  %v1177_v34 = vld [vmem:[%s1107_s8 + $0x70] sm:$0xff]  ;;  %p860_p8 = pneg %p859_p6 }
  0x61   : > { %724 = vmatprep.subr.bf16.mxu1 %v723_v18  ;;  %v237_v35 = vpack.c.bf16 %v1177_v34, %v1174_v33  ;;  %p866_p3 = por %p865_p13, %p864_p10 }
  0x63   : > { %p867_p7 = pnand %p866_p3, %p860_p8 }
  0x64   : > { %242 = vmatpush1.bf16.xpose.msra.mxu0 %v233_v21  ;;  %726 = vmatpush3.bf16.msra.mxu1 %v723_v18 }
  0x65   : > { %243 = vmatprep.subr.bf16.mxu0 %v236_v22  ;;  %728 = vmatprep.subr.bf16.mxu1 %v727_v23 }
  0x68   : > { %730 = vmatpush3.bf16.msra.mxu1 %v727_v23 }
  0x69   : > { %732 = vmatprep.subr.bf16.mxu1 %v731_v30 }
  0x6c   : > { %244 = vmatpush1.bf16.xpose.msra.mxu0 %v235_v31  ;;  %734 = vmatpush3.bf16.msra.mxu1 %v731_v30 }
  0x6d   : > { %245 = vmatprep.subr.bf16.mxu0 %v238_v32  ;;  %459 = vmatprep.subr.bf16.mxu1 %v232_v3 }
  0x74   : > { %246 = vmatpush1.bf16.xpose.msra.mxu0 %v237_v35 }
  0x7b   : > { %272 = vmatmul.mubr.bf16.vlgmr.msra.gmra.mrb[0].mxu0 %v231_v7 }
  0x7c   : > { %279 = vmatprep.mubr.bf16.mxu0 %v234_v8 }
  0x83   : > { %280 = vmatmul.mubr.bf16.gmra.mrb[4].mxu0 %v233_v21 }
  0x84   : > { %287 = vmatprep.mubr.bf16.mxu0 %v236_v22 }
  0x8b   : > { %288 = vmatmul.mubr.bf16.gmra.mrb[8].mxu0 %v235_v31 }
  0x8c   : > { %295 = vmatprep.mubr.bf16.mxu0 %v238_v32 }
  0x93   : > { %296 = vmatmul.mubr.bf16.gmra.mrb[12].mxu0 %v237_v35 }
 0x14e   : > { %v273_v36 = vpop.f32.mrb[0].mxu0 }
 0x14f   : > { %v275_v37 = vpop.f32.mrb[1].mxu0  ;;  %707 = vmatprep.mubr.msk.f32.mxu1 %vm304_vm0, %v273_v36 }
 0x150   : > { %v276_v38 = vpop.f32.mrb[2].mxu0 }
 0x151   : > { %v278_v39 = vpop.f32.mrb[3].mxu0  ;;  %708 = vmatmul.mubr.msk.f32.vlgmr.msra.gmra.mrb[0].mxu1 %vm304_vm0, %v276_v38 }
 0x152   : > { %460 = vmatpush1.bf16.msra.mxu1 %v231_v7 }
 0x153   : > { %461 = vmatprep.subr.bf16.mxu1 %v234_v8 }
 0x156   : > { %v281_v40 = vpop.f32.mrb[4].mxu0  ;;  %462 = vmatpush1.bf16.msra.mxu1 %v233_v21 }
 0x157   : > { %v283_v41 = vpop.f32.mrb[5].mxu0  ;;  %710 = vmatprep.mubr.msk.f32.mxu1 %vm304_vm0, %v281_v40  ;;  %463 = vmatprep.subr.bf16.mxu1 %v236_v22 }
 0x158   : > { %v284_v42 = vpop.f32.mrb[6].mxu0 }
 0x159   : > { %v286_v43 = vpop.f32.mrb[7].mxu0  ;;  %711 = vmatmul.mubr.msk.f32.gmra.mrb[2].mxu1 %vm304_vm0, %v284_v42 }
 0x15a   : > { %464 = vmatpush1.bf16.msra.mxu1 %v235_v31 }
 0x15b   : > { %465 = vmatprep.subr.bf16.mxu1 %v238_v32 }
 0x15e   : > { %v289_v44 = vpop.f32.mrb[8].mxu0  ;;  %466 = vmatpush1.bf16.msra.mxu1 %v237_v35 }
 0x15f   : > { %v291_v45 = vpop.f32.mrb[9].mxu0  ;;  %713 = vmatprep.mubr.msk.f32.mxu1 %vm304_vm0, %v289_v44 }
 0x160   : > { %v292_v46 = vpop.f32.mrb[10].mxu0 }
 0x161   : > { %v294_v47 = vpop.f32.mrb[11].mxu0  ;;  %714 = vmatmul.mubr.msk.f32.gmra.mrb[4].mxu1 %vm304_vm0, %v292_v46 }
 0x166   : > { %v297_v48 = vpop.f32.mrb[12].mxu0 }
 0x167   : > { %v299_v49 = vpop.f32.mrb[13].mxu0  ;;  %716 = vmatprep.mubr.msk.f32.mxu1 %vm304_vm0, %v297_v48 }
 0x168   : > { %v300_v50 = vpop.f32.mrb[14].mxu0 }
 0x169   : > { %v302_v51 = vpop.f32.mrb[15].mxu0  ;;  %717 = vmatmul.mubr.msk.f32.gmra.mrb[6].mxu1 %vm304_vm0, %v300_v50 }
 0x16a   : > { %491 = vmatprep.mubr.bf16.mxu1 %v935_v52 }
 0x224   : > { %v709_v54 = vpop.f32.mrb[0].mxu1 }
 0x225   : > { %v436_v55 = vmul.f32 %v709_v54, %v434_v53  ;;  %v395_v56 = vpop.f32.mrb[1].mxu1 }
 0x226   : > { %v435_v57 = vmul.f32 %v434_v53, %v395_v56 }
 0x228   : > { %v443_v58 = vpack.c.bf16 %v436_v55, %v435_v57 }
 0x22a   : > { %664 = vmatmul.mubr.msk.bf16.vlgmr.msra.gmra.mrb[8].mxu1 %vm304_vm0, %v443_v58 }
 0x22b   : > { %501 = vmatprep.mubr.bf16.mxu1 %v935_v52 }
 0x22c   : > { %v712_v59 = vpop.f32.mrb[2].mxu1 }
 0x22d   : > { %v438_v60 = vmul.f32 %v712_v59, %v434_v53  ;;  %v405_v61 = vpop.f32.mrb[3].mxu1 }
 0x22e   : > { %v437_v62 = vmul.f32 %v434_v53, %v405_v61 }
 0x230   : > { %v444_v63 = vpack.c.bf16 %v438_v60, %v437_v62 }
 0x232   : > { %665 = vmatmul.mubr.msk.bf16.gmra.mrb[12].mxu1 %vm304_vm0, %v444_v63 }
 0x233   : > { %511 = vmatprep.mubr.bf16.mxu1 %v935_v52 }
 0x234   : > { %v715_v3 = vpop.f32.mrb[4].mxu1 }
 0x235   : > { %v440_v7 = vmul.f32 %v715_v3, %v434_v53  ;;  %v415_v8 = vpop.f32.mrb[5].mxu1 }
 0x236   : > { %v439_v12 = vmul.f32 %v434_v53, %v415_v8 }
 0x238   : > { %v445_v13 = vpack.c.bf16 %v440_v7, %v439_v12 }
 0x23a   : > { %666 = vmatmul.mubr.msk.bf16.gmra.mrb[16].mxu1 %vm304_vm0, %v445_v13 }
 0x23b   : > { %521 = vmatprep.mubr.bf16.mxu1 %v935_v52 }
 0x23c   : > { %v718_v15 = vpop.f32.mrb[6].mxu1 }
 0x23d   : > { %v442_v16 = vmul.f32 %v718_v15, %v434_v53  ;;  %v425_v17 = vpop.f32.mrb[7].mxu1 }
 0x23e   : > { %v441_v18 = vmul.f32 %v434_v53, %v425_v17 }
 0x240   : > { %v446_v19 = vpack.c.bf16 %v442_v16, %v441_v18 }
 0x242   : > { %667 = vmatmul.mubr.msk.bf16.gmra.mrb[20].mxu1 %vm304_vm0, %v446_v19 }
 0x2fd   : > { %v493_v20 = vpop.f32.mrb[8].mxu1 }
 0x2fe   : > { %v494_v21 = vadd.f32 %v493_v20, %v1124_v2  ;;  %v495_v22 = vpop.f32.mrb[9].mxu1 }
 0x2ff   : > { %v496_v23 = vadd.f32 %v495_v22, %v1118_v0  ;;  %v497_v24 = vpop.f32.mrb[10].mxu1 }
 0x300   : > { %532 = vst [vmem:[%s1197_s21] sm:$0xff] %v494_v21  ;;  %v498_v25 = vadd.f32 %v497_v24, %v1129_v4  ;;  %v499_v30 = vpop.f32.mrb[11].mxu1 }
 0x301   : > { %533 = vst [vmem:[%s1197_s21 + $0x8] sm:$0xff] %v496_v23  ;;  %v500_v2 = vadd.f32 %v499_v30, %v1121_v1 }
 0x302   : > { %534 = vst [vmem:[%s1197_s21 + $0x10] sm:$0xff] %v498_v25 }
 0x303   : > { %535 = vst [vmem:[%s1197_s21 + $0x18] sm:$0xff] %v500_v2 }
 0x305   : > { %v503_v0 = vpop.f32.mrb[12].mxu1 }
 0x306   : > { %v504_v31 = vadd.f32 %v503_v0, %v1142_v9  ;;  %v505_v32 = vpop.f32.mrb[13].mxu1 }
 0x307   : > { %v506_v35 = vadd.f32 %v505_v32, %v1132_v5  ;;  %v507_v36 = vpop.f32.mrb[14].mxu1 }
 0x308   : > { %536 = vst [vmem:[%s1197_s21 + $0x20] sm:$0xff] %v504_v31  ;;  %v508_v4 = vadd.f32 %v507_v36, %v1145_v10  ;;  %v509_v37 = vpop.f32.mrb[15].mxu1 }
 0x309   : > { %537 = vst [vmem:[%s1197_s21 + $0x28] sm:$0xff] %v506_v35  ;;  %v510_v1 = vadd.f32 %v509_v37, %v1135_v6 }
 0x30a   : > { %538 = vst [vmem:[%s1197_s21 + $0x30] sm:$0xff] %v508_v4 }
 0x30b   : > { %539 = vst [vmem:[%s1197_s21 + $0x38] sm:$0xff] %v510_v1 }
 0x30d   : > { %v513_v9 = vpop.f32.mrb[16].mxu1 }
 0x30e   : > { %v514_v38 = vadd.f32 %v513_v9, %v1158_v26  ;;  %v515_v39 = vpop.f32.mrb[17].mxu1 }
 0x30f   : > { %v516_v5 = vadd.f32 %v515_v39, %v1148_v11  ;;  %v517_v40 = vpop.f32.mrb[18].mxu1 }
 0x310   : > { %540 = vst [vmem:[%s1197_s21 + $0x40] sm:$0xff] %v514_v38  ;;  %v518_v10 = vadd.f32 %v517_v40, %v1161_v27  ;;  %v519_v41 = vpop.f32.mrb[19].mxu1 }
 0x311   : > { %541 = vst [vmem:[%s1197_s21 + $0x48] sm:$0xff] %v516_v5  ;;  %v520_v6 = vadd.f32 %v519_v41, %v1151_v14 }
 0x312   : > { %542 = vst [vmem:[%s1197_s21 + $0x50] sm:$0xff] %v518_v10 }
 0x313   : > { %543 = vst [vmem:[%s1197_s21 + $0x58] sm:$0xff] %v520_v6 }
 0x315   : > { %v523_v42 = vpop.f32.mrb[20].mxu1 }
 0x316   : > { %v524_v11 = vadd.f32 %v523_v42, %v1174_v33  ;;  %v525_v26 = vpop.f32.mrb[21].mxu1 }
 0x317   : > { %v526_v43 = vadd.f32 %v525_v26, %v1164_v28  ;;  %v527_v27 = vpop.f32.mrb[22].mxu1 }
 0x318   : > { %544 = vst [vmem:[%s1197_s21 + $0x60] sm:$0xff] %v524_v11  ;;  %v528_v44 = vadd.f32 %v527_v27, %v1177_v34  ;;  %v529_v45 = vpop.f32.mrb[23].mxu1 }
 0x319   : > { %545 = vst [vmem:[%s1197_s21 + $0x68] sm:$0xff] %v526_v43  ;;  %v530_v14 = vadd.f32 %v529_v45, %v1167_v29 }
 0x31a   : > { %546 = vst [vmem:[%s1197_s21 + $0x70] sm:$0xff] %v528_v44 }
 0x31b   : > { %547 = vst [vmem:[%s1197_s21 + $0x78] sm:$0xff] %v530_v14 }
 0x31c   : > { %870 = shalt.err (!%p867_p7)
}
 0x31d   : > { %s871_s28 = scalar_lea.hbm %s1230_s9, 2048  ;;  %s875_s30 = scalar_lea.hbm %s1283_s3, 4096 }
 0x31e   : > { %p872_p9 = scmp.ne.s32.totalorder %s1230_s9, %s871_s28  ;;  %p876_p5 = scmp.lt.u32.totalorder %s1230_s9, %s1283_s3 }
 0x31f   : > { %p877_p11 = scmp.lt.u32.totalorder %s875_s30, %s871_s28  ;;  %p879_p4 = scmp.lt.u32.totalorder %s871_s28, %s1230_s9 }
 0x320   : > { %p873_p2 = pnand %p872_p9, %p1053_p12 }
 0x321   : > { %p878_p1 = por %p877_p11, %p876_p5 }
 0x322   : > { %p874_p0 = pneg %p873_p2 }
 0x323   : > { %p880_p6 = por %p879_p4, %p878_p1 }
 0x325   : > { %p881_p8 = pnand %p880_p6, %p874_p0 }
 0x327   : > { %884 = shalt.err (!%p881_p8)
}
 0x328   : > { %s937_s8 = smov 256   ;;  %s938_s19 = smov 16  }
 0x329   : > { %741 = dma.vmem_to_hbm [thread:$0]  (%p1053_p12), %s1232_s26, 2048, %s1230_s9, %s549_s2, %s937_s8, %s937_s8, %s938_s19  }
 0x32a PF: > { %s577_s21 = sand.u32 1, %s915_s14   ;;  %p1298_p10 = scmp.ne.s32.totalorder %s1288_s20, 0 }
 0x32b   : > { %p1299_p13 = scmp.ge.s32.totalorder %s927_s17, 2  ;;  %s578_s4 = scalar_lea.sflag [#allocation5], %s577_s21 }
 0x32d   : > { %p752_p3 = pnand %p1299_p13, %p1298_p10 }
 0x32f   : > { %910 = dma.done.wait (!%p752_p3), %s578_s4, 2048  }
 0x330   : > { %912 = vsyncadd (!%p752_p3), %s578_s4, 4294965248  ;;  %p18_p7 = scmp.ge.s32.totalorder %s1018_s25, 4   ;;  %s1300_s14 = smov %s919_s15 }
 0x331   : > { %s1301_s15 = smov %s923_s16  ;;  %s1302_s16 = smov %s1049_s13 }
 0x332   : > { %s1303_s17 = smov %s1018_s25  ;;  %20 = sbr.rel (!%p18_p7) target bundleno = 8 (0x8), region = 81 }
 0x339   :  { %583 = vsyncpa [#allocation4], 1 }
 0x33a   :  { %585 = vsyncpa [#allocation4 + $0x1], 1 }
 0x33b   :  { %586 = vsyncpa [#allocation7], 1 }
 0x33c   :  { %587 = vsyncpa [#allocation5], 1 }
 0x33d   :  { %589 = vsyncpa [#allocation5 + $0x1], 1 }

</bundles_post_ra>
